<compile_context>
chip_gen: v5e
topology: v5e:2x2
jax: 0.10.0
libtpu: 0.0.40
codegen_flags: <defaults>
</compile_context>

<pallas_src>
import math
from typing import NamedTuple, Tuple

import jax
import jax.numpy as jnp
from jax.experimental import pallas as pl
from jax.experimental.pallas import tpu as pltpu

_LANE = 128        # vreg lane width (last dim)
_SUBLANE_F32 = 8   # f32 sublane width (second-to-last dim)
_SUBLANE_BF16 = 16


def _round_up(n, m):
    return ((n + m - 1) // m) * m


def _vmem_cap_bytes():
    """Per-generation clamp for vmem_limit_bytes (leave headroom below physical VMEM)."""
    try:
        kind = jax.devices()[0].device_kind.lower()
    except Exception:
        kind = ""
    if "v2" in kind or "v3" in kind:
        return 12 << 20
    if "v4" in kind or "v5" in kind or "v6" in kind:
        return 100 << 20          # 128 MiB physical on v4/v5e/v5p/v6e
    return 56 << 20               # v7x-class: 64 MiB physical per TensorCore


class PreparedParams(NamedTuple):
    flat: Tuple[jax.Array, ...]   # (w0, b0, w1, b1, ...) zero-padded; weights maybe bf16
    d_in: int
    d_out: int
    d_in_pad: int
    d_out_pad: int
    feat_pads: Tuple[int, ...]    # padded out-features per linear layer
    n_linear: int


def prepare_params(params, *, bf16_matmul=False):
    """Pad (and optionally pre-cast) params ONCE so repeated forward calls reuse them.

    Zero padding is numerically exact here: tanh(0) = 0 and padded weight rows/cols are 0.
    Weights are pre-cast to bf16 on the host when bf16_matmul=True; biases stay f32
    (negligible bytes, added in f32 before tanh).
    """
    d_in = params[0][0].shape[0]
    d_out = params[-1][0].shape[1]
    d_in_pad = _round_up(d_in, _LANE)
    w_dtype = jnp.bfloat16 if bf16_matmul else jnp.float32

    flat = []
    feat_pads = []
    prev_pad = d_in_pad
    for (w, b) in params:
        fin, fout = w.shape
        fout_pad = _round_up(fout, _LANE)
        w_p = (jnp.zeros((prev_pad, fout_pad), jnp.float32)
               .at[:fin, :fout].set(jnp.asarray(w, jnp.float32))
               .astype(w_dtype))
        b_p = (jnp.zeros((1, fout_pad), jnp.float32)
               .at[:, :fout].set(jnp.asarray(b, jnp.float32).reshape(1, fout)))
        flat += [w_p, b_p]
        feat_pads.append(fout_pad)
        prev_pad = fout_pad

    return PreparedParams(tuple(flat), d_in, d_out, d_in_pad, prev_pad,
                          tuple(feat_pads), len(params))


def _make_kernel(n_linear, n_chunks, chunk_rows, stream_shapes):
    """refs = (x, w0, b0, ..., w_{L-1}, b_{L-1}, out[, wbuf, sem])."""
    streaming = stream_shapes is not None

    def kernel(*refs):
        x_ref = refs[0]
        wb = refs[1:1 + 2 * n_linear]
        o_ref = refs[1 + 2 * n_linear]
        if streaming:
            wbuf = refs[2 + 2 * n_linear]
            sem = refs[3 + 2 * n_linear]

            def start_fetch(li, slot):
                fin_p, fout_p = stream_shapes[li]
                pltpu.make_async_copy(wb[2 * li],
                                      wbuf.at[slot, :fin_p, :fout_p],
                                      sem.at[slot]).start()

            start_fetch(0, 0)   # prime layer-0 weight DMA

        # Split the batch tile into chunks: gives the scheduler freedom to overlap
        # chunk-0 tanh (EUP) with chunk-1 matmul (MXU) inside each layer.
        hs = [x_ref[pl.ds(c * chunk_rows, chunk_rows), :].astype(jnp.float32)
              for c in range(n_chunks)]

        for li in range(n_linear):
            if streaming:
                slot = li & 1
                fin_p, fout_p = stream_shapes[li]
                pltpu.make_async_copy(wb[2 * li],
                                      wbuf.at[slot, :fin_p, :fout_p],
                                      sem.at[slot]).wait()
                if li + 1 < n_linear:
                    start_fetch(li + 1, 1 - slot)   # overlap next layer's weight DMA
                w = wbuf[slot, :fin_p, :fout_p]
            else:
                w = wb[2 * li][...]
            b = wb[2 * li + 1][...]                  # (1, fout_pad) f32, broadcast once
            for c in range(n_chunks):
                y = jnp.dot(hs[c].astype(w.dtype), w,
                            preferred_element_type=jnp.float32)
                hs[c] = jnp.tanh(y + b)              # f32 tanh on EUP; padded cols stay 0

        for c in range(n_chunks):
            o_ref[pl.ds(c * chunk_rows, chunk_rows), :] = hs[c].astype(o_ref.dtype)

    return kernel


def deepnet_forward(x, params, *, max_batch_tile=256, bf16_matmul=False,
                    stream_weights=None):
    """tanh(...tanh(tanh(x@W0+b0)@W1+b1)...@Wout+bout) fused into a single pallas_call."""
    if not isinstance(params, PreparedParams):
        params = prepare_params(params, bf16_matmul=bf16_matmul)

    assert x.ndim == 2, "DeepNet expects (batch, D_in) input"
    B, D_in = x.shape
    assert D_in == params.d_in
    out_dtype = x.dtype

    d_in_pad, d_out_pad = params.d_in_pad, params.d_out_pad
    feat_pads = params.feat_pads
    n_linear = params.n_linear
    max_feat_pad = max((d_in_pad,) + feat_pads)

    # --- batch tile / grid -------------------------------------------------------
    # bf16 activations need (16, 128) tiles; f32 needs (8, 128).
    sub = _SUBLANE_BF16 if jnp.dtype(x.dtype) == jnp.dtype(jnp.bfloat16) else _SUBLANE_F32
    # Aim for >= 2 grid steps so the "parallel" axis can shard across v7x's two TensorCores;
    # a 2-step loop is harmless (~0.35us/step) on single-TC v5e/v6e.
    tm = _round_up(max(1, -(-B // 2)), sub)
    tm = max(sub, min(tm, max_batch_tile))
    B_pad = _round_up(B, tm)
    grid = (B_pad // tm,)

    # pad input only when needed (skip the extra HBM pass when already aligned)
    if (B_pad, d_in_pad) == (B, D_in):
        x_p = x
    else:
        x_p = jnp.zeros((B_pad, d_in_pad), x.dtype).at[:B, :D_in].set(x)

    # small-H / EUP-bound regime -> split the tile into 2 chunks inside the kernel
    n_chunks = 2 if (tm >= 2 * sub and tm % (2 * sub) == 0 and max_feat_pad <= 256) else 1
    chunk_rows = tm // n_chunks

    flat_inputs = (x_p,) + params.flat
    weights = params.flat[0::2]
    biases = params.flat[1::2]
    w_bytes = sum(int(a.size) * a.dtype.itemsize for a in weights)
    b_bytes = sum(int(a.size) * a.dtype.itemsize for a in biases)
    x_itemsize = jnp.dtype(x.dtype).itemsize
    o_itemsize = jnp.dtype(out_dtype).itemsize

    # --- VMEM budget from the actual block allocations, clamped per generation -----
    cap = _vmem_cap_bytes()
    io_tiles = 2 * tm * d_in_pad * x_itemsize + 2 * tm * d_out_pad * o_itemsize
    act_tmp = 4 * tm * max_feat_pad * 4 + (2 << 20)          # f32 temporaries + scratch margin
    resident_need = io_tiles + 2 * (w_bytes + b_bytes) + act_tmp

    stream_shapes = None
    if stream_weights is None:
        stream_weights = resident_need > cap                 # auto: stream when it can't fit
    if stream_weights:
        fins = (d_in_pad,) + feat_pads[:-1]
        stream_shapes = tuple(zip(fins, feat_pads))
        max_fin_pad = max(fins)
        max_fout_pad = max(feat_pads)
        w_itemsize = jnp.dtype(weights[0].dtype).itemsize
        need = (io_tiles + 2 * b_bytes + act_tmp
                + 2 * max_fin_pad * max_fout_pad * w_itemsize)   # 2-deep weight stream buffer
    else:
        need = resident_need
    vmem_limit = int(min(cap, max(32 << 20, need)))

    # --- cost estimate so XLA schedules surrounding ops around the custom call ------
    flops, trans = 0, 0
    prev = d_in_pad
    for fp in feat_pads:
        flops += 2 * B_pad * prev * fp
        trans += B_pad * fp
        prev = fp
    bytes_accessed = (int(x_p.size) * x_itemsize + w_bytes + b_bytes
                      + B_pad * d_out_pad * o_itemsize)
    cost = pl.CostEstimate(flops=int(flops), transcendentals=int(trans),
                           bytes_accessed=int(bytes_accessed))

    kernel = _make_kernel(n_linear, n_chunks, chunk_rows, stream_shapes)
    x_spec = pl.BlockSpec((tm, d_in_pad), lambda i: (i, 0))
    out_spec = pl.BlockSpec((tm, d_out_pad), lambda i: (i, 0))
    out_shape = jax.ShapeDtypeStruct((B_pad, d_out_pad), out_dtype)

    def build(single_buffer_resident):
        buffered = getattr(pl, "Buffered", None)

        def resident_spec(a):
            # Constant block index -> block never changes; a single VMEM buffer suffices.
            if single_buffer_resident and buffered is not None:
                return pl.BlockSpec(a.shape, lambda i: (0, 0), pipeline_mode=buffered(1))
            return pl.BlockSpec(a.shape, lambda i: (0, 0))

        in_specs = [x_spec]
        scratch = []
        for li in range(n_linear):
            w_a, b_a = params.flat[2 * li], params.flat[2 * li + 1]
            if stream_shapes is not None:
                in_specs.append(pl.BlockSpec(memory_space=pl.ANY))  # weight stays in HBM
            else:
                in_specs.append(resident_spec(w_a))
            in_specs.append(resident_spec(b_a))
        if stream_shapes is not None:
            scratch = [pltpu.VMEM((2, max(s[0] for s in stream_shapes),
                                   max(s[1] for s in stream_shapes)), weights[0].dtype),
                       pltpu.SemaphoreType.DMA((2,))]

        return pl.pallas_call(
            kernel,
            out_shape=out_shape,
            grid=grid,
            in_specs=in_specs,
            out_specs=out_spec,
            scratch_shapes=scratch,
            compiler_params=pltpu.CompilerParams(
                dimension_semantics=("parallel",),
                vmem_limit_bytes=vmem_limit,
            ),
            cost_estimate=cost,
        )

    try:
        y_p = build(True)(*flat_inputs)
        y_p = jax.block_until_ready(y_p)   # surface compile/run errors so we can fall back
    except Exception:
        # Fallback: default (double) buffering for the constant-index resident blocks.
        y_p = build(False)(*flat_inputs)

    if (B_pad, d_out_pad) != (B, params.d_out):
        y_p = y_p[:B, :params.d_out]
    return y_p


def init_deepnet_params(key, D_in, H, D_out, layers):
    """nn.Linear-style U(-1/sqrt(fan_in), 1/sqrt(fan_in)) init.
    Weights stored as (in_features, out_features) (transpose of PyTorch layout)."""
    params = []
    dims = [(D_in, H)] + [(H, H) for _ in range(layers - 1)] + [(H, D_out)]
    for (fin, fout) in dims:
        key, kw, kb = jax.random.split(key, 3)
        bound = 1.0 / math.sqrt(fin)
        w = jax.random.uniform(kw, (fin, fout), jnp.float32, -bound, bound)
        b = jax.random.uniform(kb, (1, fout), jnp.float32, -bound, bound)
        params.append((w, b))
    return params


def deepnet_reference(x, params):
    h = x
    for (w, b) in params[:-1]:
        h = jnp.tanh(h @ w + b)
    w_out, b_out = params[-1]
    return jnp.tanh(h @ w_out + b_out)


if __name__ == "__main__":
    key = jax.random.PRNGKey(0)

    # ---- Test 1: the DeepNet shapes from the spec (small) -------------------------
    B, D_in, H, D_out, layers = 8, 16, 32, 4, 3
    key, kx, kp = jax.random.split(key, 3)
    x = jax.random.normal(kx, (B, D_in), jnp.float32)
    params = init_deepnet_params(kp, D_in, H, D_out, layers)
    y = jax.block_until_ready(deepnet_forward(x, params))
    y_ref = deepnet_reference(x, params)
    assert y.shape == (B, D_out)
    assert jnp.allclose(y, y_ref, atol=2e-2, rtol=2e-2), "test1 mismatch vs reference"

    # ---- Test 2: multi-step batch grid + in-kernel batch chunking + cached params --
    B2, D_in2, H2, D_out2, layers2 = 64, 48, 128, 10, 3
    key, kx2, kp2 = jax.random.split(key, 3)
    x2 = jax.random.normal(kx2, (B2, D_in2), jnp.float32)
    params2 = init_deepnet_params(kp2, D_in2, H2, D_out2, layers2)
    prepared2 = prepare_params(params2)               # pad once, reuse across calls
    y2 = jax.block_until_ready(deepnet_forward(x2, prepared2))
    y2_ref = deepnet_reference(x2, params2)
    assert y2.shape == (B2, D_out2)
    assert jnp.allclose(y2, y2_ref, atol=2e-2, rtol=2e-2), "test2 mismatch vs reference"

    # ---- Test 3: HBM-resident weights streamed via manual double-buffered DMA ------
    y3 = jax.block_until_ready(deepnet_forward(x2, prepared2, stream_weights=True))
    assert jnp.allclose(y3, y2_ref, atol=2e-2, rtol=2e-2), "test3 (streaming) mismatch"

    # ---- Test 4: bf16 matmul operands (weights pre-cast on the host) ---------------
    # TODO(synk): bf16 activation casts compound across depth; first/last layer could stay f32.
    prepared2_bf16 = prepare_params(params2, bf16_matmul=True)
    y4 = jax.block_until_ready(deepnet_forward(x2, prepared2_bf16))
    assert jnp.allclose(y4, y2_ref, atol=6e-2, rtol=6e-2), "test4 (bf16) mismatch"

    print("KERNEL_OK")
</pallas_src>

<mosaic_0001>
module attributes {stable_mosaic.version = 11 : i64} {
  func.func @kernel(%arg0: i32, %arg1: memref<8x128xf32, #tpu.memory_space<vmem>>, %arg2: memref<128x128xf32, #tpu.memory_space<vmem>>, %arg3: memref<1x128xf32, #tpu.memory_space<vmem>>, %arg4: memref<128x128xf32, #tpu.memory_space<vmem>>, %arg5: memref<1x128xf32, #tpu.memory_space<vmem>>, %arg6: memref<128x128xf32, #tpu.memory_space<vmem>>, %arg7: memref<1x128xf32, #tpu.memory_space<vmem>>, %arg8: memref<128x128xf32, #tpu.memory_space<vmem>>, %arg9: memref<1x128xf32, #tpu.memory_space<vmem>>, %arg10: memref<8x128xf32, #tpu.memory_space<vmem>>) attributes {dimension_semantics = [#tpu.dimension_semantics<parallel>], iteration_bounds = array<i64: 1>, scalar_prefetch = 0 : i64, scratch_operands = 0 : i64, tpu.core_type = #tpu.core_type<tc>, window_params = [{transform_indices = @transform_0, window_bounds = array<i64: 8, 128>}, {pipeline_mode = #tpu.pipeline_mode<synchronous>, transform_indices = @transform_1, window_bounds = array<i64: 128, 128>}, {pipeline_mode = #tpu.pipeline_mode<synchronous>, transform_indices = @transform_2, window_bounds = array<i64: 1, 128>}, {pipeline_mode = #tpu.pipeline_mode<synchronous>, transform_indices = @transform_3, window_bounds = array<i64: 128, 128>}, {pipeline_mode = #tpu.pipeline_mode<synchronous>, transform_indices = @transform_4, window_bounds = array<i64: 1, 128>}, {pipeline_mode = #tpu.pipeline_mode<synchronous>, transform_indices = @transform_5, window_bounds = array<i64: 128, 128>}, {pipeline_mode = #tpu.pipeline_mode<synchronous>, transform_indices = @transform_6, window_bounds = array<i64: 1, 128>}, {pipeline_mode = #tpu.pipeline_mode<synchronous>, transform_indices = @transform_7, window_bounds = array<i64: 128, 128>}, {pipeline_mode = #tpu.pipeline_mode<synchronous>, transform_indices = @transform_8, window_bounds = array<i64: 1, 128>}, {transform_indices = @transform_9, window_bounds = array<i64: 8, 128>}]} {
    %c0 = arith.constant 0 : index
    %c0_0 = arith.constant 0 : index
    %0 = vector.load %arg1[%c0, %c0_0] : memref<8x128xf32, #tpu.memory_space<vmem>>, vector<8x128xf32>
    %c0_1 = arith.constant 0 : index
    %c0_2 = arith.constant 0 : index
    %1 = vector.load %arg2[%c0_1, %c0_2] : memref<128x128xf32, #tpu.memory_space<vmem>>, vector<128x128xf32>
    %c0_3 = arith.constant 0 : index
    %c0_4 = arith.constant 0 : index
    %2 = vector.load %arg3[%c0_3, %c0_4] : memref<1x128xf32, #tpu.memory_space<vmem>>, vector<1x128xf32>
    %cst = arith.constant dense<0.000000e+00> : vector<8x128xf32>
    %3 = tpu.matmul %0, %1, %cst {dimension_numbers = #tpu.dot_dimension_numbers<[1], [0], [0], [1], [0, 0, 1, 1], [], []>} : vector<8x128xf32>, vector<128x128xf32>, vector<8x128xf32> -> vector<8x128xf32>
    %4 = vector.broadcast %2 : vector<1x128xf32> to vector<8x128xf32>
    %5 = arith.addf %3, %4 : vector<8x128xf32>
    %6 = math.tanh %5 : vector<8x128xf32>
    %c0_5 = arith.constant 0 : index
    %c0_6 = arith.constant 0 : index
    %7 = vector.load %arg4[%c0_5, %c0_6] : memref<128x128xf32, #tpu.memory_space<vmem>>, vector<128x128xf32>
    %c0_7 = arith.constant 0 : index
    %c0_8 = arith.constant 0 : index
    %8 = vector.load %arg5[%c0_7, %c0_8] : memref<1x128xf32, #tpu.memory_space<vmem>>, vector<1x128xf32>
    %cst_9 = arith.constant dense<0.000000e+00> : vector<8x128xf32>
    %9 = tpu.matmul %6, %7, %cst_9 {dimension_numbers = #tpu.dot_dimension_numbers<[1], [0], [0], [1], [0, 0, 1, 1], [], []>} : vector<8x128xf32>, vector<128x128xf32>, vector<8x128xf32> -> vector<8x128xf32>
    %10 = vector.broadcast %8 : vector<1x128xf32> to vector<8x128xf32>
    %11 = arith.addf %9, %10 : vector<8x128xf32>
    %12 = math.tanh %11 : vector<8x128xf32>
    %c0_10 = arith.constant 0 : index
    %c0_11 = arith.constant 0 : index
    %13 = vector.load %arg6[%c0_10, %c0_11] : memref<128x128xf32, #tpu.memory_space<vmem>>, vector<128x128xf32>
    %c0_12 = arith.constant 0 : index
    %c0_13 = arith.constant 0 : index
    %14 = vector.load %arg7[%c0_12, %c0_13] : memref<1x128xf32, #tpu.memory_space<vmem>>, vector<1x128xf32>
    %cst_14 = arith.constant dense<0.000000e+00> : vector<8x128xf32>
    %15 = tpu.matmul %12, %13, %cst_14 {dimension_numbers = #tpu.dot_dimension_numbers<[1], [0], [0], [1], [0, 0, 1, 1], [], []>} : vector<8x128xf32>, vector<128x128xf32>, vector<8x128xf32> -> vector<8x128xf32>
    %16 = vector.broadcast %14 : vector<1x128xf32> to vector<8x128xf32>
    %17 = arith.addf %15, %16 : vector<8x128xf32>
    %18 = math.tanh %17 : vector<8x128xf32>
    %c0_15 = arith.constant 0 : index
    %c0_16 = arith.constant 0 : index
    %19 = vector.load %arg8[%c0_15, %c0_16] : memref<128x128xf32, #tpu.memory_space<vmem>>, vector<128x128xf32>
    %c0_17 = arith.constant 0 : index
    %c0_18 = arith.constant 0 : index
    %20 = vector.load %arg9[%c0_17, %c0_18] : memref<1x128xf32, #tpu.memory_space<vmem>>, vector<1x128xf32>
    %cst_19 = arith.constant dense<0.000000e+00> : vector<8x128xf32>
    %21 = tpu.matmul %18, %19, %cst_19 {dimension_numbers = #tpu.dot_dimension_numbers<[1], [0], [0], [1], [0, 0, 1, 1], [], []>} : vector<8x128xf32>, vector<128x128xf32>, vector<8x128xf32> -> vector<8x128xf32>
    %22 = vector.broadcast %20 : vector<1x128xf32> to vector<8x128xf32>
    %23 = arith.addf %21, %22 : vector<8x128xf32>
    %24 = math.tanh %23 : vector<8x128xf32>
    %c0_20 = arith.constant 0 : index
    %c0_21 = arith.constant 0 : index
    %25 = vector.load %arg10[%c0_20, %c0_21] : memref<8x128xf32, #tpu.memory_space<vmem>>, vector<8x128xf32>
    tpu.vector_store %arg10[%c0_20, %c0_21], %24 {strides = array<i32>} : memref<8x128xf32, #tpu.memory_space<vmem>>, vector<8x128xf32>,
    return
  }
  func.func @transform_0(%arg0: i32) -> (i32, i32) {
    %c0_i32 = arith.constant 0 : i32
    %c0_i32_0 = arith.constant 0 : i32
    return %arg0, %c0_i32 : i32, i32
  }
  func.func @transform_1(%arg0: i32) -> (i32, i32) {
    %c0_i32 = arith.constant 0 : i32
    %c0_i32_0 = arith.constant 0 : i32
    %c0_i32_1 = arith.constant 0 : i32
    return %c0_i32, %c0_i32_0 : i32, i32
  }
  func.func @transform_2(%arg0: i32) -> (i32, i32) {
    %c0_i32 = arith.constant 0 : i32
    %c0_i32_0 = arith.constant 0 : i32
    %c0_i32_1 = arith.constant 0 : i32
    return %c0_i32, %c0_i32_0 : i32, i32
  }
  func.func @transform_3(%arg0: i32) -> (i32, i32) {
    %c0_i32 = arith.constant 0 : i32
    %c0_i32_0 = arith.constant 0 : i32
    %c0_i32_1 = arith.constant 0 : i32
    return %c0_i32, %c0_i32_0 : i32, i32
  }
  func.func @transform_4(%arg0: i32) -> (i32, i32) {
    %c0_i32 = arith.constant 0 : i32
    %c0_i32_0 = arith.constant 0 : i32
    %c0_i32_1 = arith.constant 0 : i32
    return %c0_i32, %c0_i32_0 : i32, i32
  }
  func.func @transform_5(%arg0: i32) -> (i32, i32) {
    %c0_i32 = arith.constant 0 : i32
    %c0_i32_0 = arith.constant 0 : i32
    %c0_i32_1 = arith.constant 0 : i32
    return %c0_i32, %c0_i32_0 : i32, i32
  }
  func.func @transform_6(%arg0: i32) -> (i32, i32) {
    %c0_i32 = arith.constant 0 : i32
    %c0_i32_0 = arith.constant 0 : i32
    %c0_i32_1 = arith.constant 0 : i32
    return %c0_i32, %c0_i32_0 : i32, i32
  }
  func.func @transform_7(%arg0: i32) -> (i32, i32) {
    %c0_i32 = arith.constant 0 : i32
    %c0_i32_0 = arith.constant 0 : i32
    %c0_i32_1 = arith.constant 0 : i32
    return %c0_i32, %c0_i32_0 : i32, i32
  }
  func.func @transform_8(%arg0: i32) -> (i32, i32) {
    %c0_i32 = arith.constant 0 : i32
    %c0_i32_0 = arith.constant 0 : i32
    %c0_i32_1 = arith.constant 0 : i32
    return %c0_i32, %c0_i32_0 : i32, i32
  }
  func.func @transform_9(%arg0: i32) -> (i32, i32) {
    %c0_i32 = arith.constant 0 : i32
    %c0_i32_0 = arith.constant 0 : i32
    return %arg0, %c0_i32 : i32, i32
  }
}

module attributes {stable_mosaic.version = 11 : i64} {
  func.func @kernel(%arg0: i32, %arg1: memref<8x128xf32, #tpu.memory_space<vmem>>, %arg2: memref<128x128xf32, #tpu.memory_space<vmem>>, %arg3: memref<1x128xf32, #tpu.memory_space<vmem>>, %arg4: memref<128x128xf32, #tpu.memory_space<vmem>>, %arg5: memref<1x128xf32, #tpu.memory_space<vmem>>, %arg6: memref<128x128xf32, #tpu.memory_space<vmem>>, %arg7: memref<1x128xf32, #tpu.memory_space<vmem>>, %arg8: memref<128x128xf32, #tpu.memory_space<vmem>>, %arg9: memref<1x128xf32, #tpu.memory_space<vmem>>, %arg10: memref<8x128xf32, #tpu.memory_space<vmem>>) attributes {dimension_semantics = [#tpu.dimension_semantics<parallel>], iteration_bounds = array<i64: 1>, scalar_prefetch = 0 : i64, scratch_operands = 0 : i64, tpu.core_type = #tpu.core_type<tc>, window_params = [{transform_indices = @transform_0, window_bounds = array<i64: 8, 128>}, {pipeline_mode = #tpu.pipeline_mode<synchronous>, transform_indices = @transform_1, window_bounds = array<i64: 128, 128>}, {pipeline_mode = #tpu.pipeline_mode<synchronous>, transform_indices = @transform_2, window_bounds = array<i64: 1, 128>}, {pipeline_mode = #tpu.pipeline_mode<synchronous>, transform_indices = @transform_3, window_bounds = array<i64: 128, 128>}, {pipeline_mode = #tpu.pipeline_mode<synchronous>, transform_indices = @transform_4, window_bounds = array<i64: 1, 128>}, {pipeline_mode = #tpu.pipeline_mode<synchronous>, transform_indices = @transform_5, window_bounds = array<i64: 128, 128>}, {pipeline_mode = #tpu.pipeline_mode<synchronous>, transform_indices = @transform_6, window_bounds = array<i64: 1, 128>}, {pipeline_mode = #tpu.pipeline_mode<synchronous>, transform_indices = @transform_7, window_bounds = array<i64: 128, 128>}, {pipeline_mode = #tpu.pipeline_mode<synchronous>, transform_indices = @transform_8, window_bounds = array<i64: 1, 128>}, {transform_indices = @transform_9, window_bounds = array<i64: 8, 128>}]} {
    %c0 = arith.constant 0 : index
    %c0_0 = arith.constant 0 : index
    %0 = vector.load %arg1[%c0, %c0_0] : memref<8x128xf32, #tpu.memory_space<vmem>>, vector<8x128xf32>
    %c0_1 = arith.constant 0 : index
    %c0_2 = arith.constant 0 : index
    %1 = vector.load %arg2[%c0_1, %c0_2] : memref<128x128xf32, #tpu.memory_space<vmem>>, vector<128x128xf32>
    %c0_3 = arith.constant 0 : index
    %c0_4 = arith.constant 0 : index
    %2 = vector.load %arg3[%c0_3, %c0_4] : memref<1x128xf32, #tpu.memory_space<vmem>>, vector<1x128xf32>
    %cst = arith.constant dense<0.000000e+00> : vector<8x128xf32>
    %3 = tpu.matmul %0, %1, %cst {dimension_numbers = #tpu.dot_dimension_numbers<[1], [0], [0], [1], [0, 0, 1, 1], [], []>} : vector<8x128xf32>, vector<128x128xf32>, vector<8x128xf32> -> vector<8x128xf32>
    %4 = vector.broadcast %2 : vector<1x128xf32> to vector<8x128xf32>
    %5 = arith.addf %3, %4 : vector<8x128xf32>
    %6 = math.tanh %5 : vector<8x128xf32>
    %c0_5 = arith.constant 0 : index
    %c0_6 = arith.constant 0 : index
    %7 = vector.load %arg4[%c0_5, %c0_6] : memref<128x128xf32, #tpu.memory_space<vmem>>, vector<128x128xf32>
    %c0_7 = arith.constant 0 : index
    %c0_8 = arith.constant 0 : index
    %8 = vector.load %arg5[%c0_7, %c0_8] : memref<1x128xf32, #tpu.memory_space<vmem>>, vector<1x128xf32>
    %cst_9 = arith.constant dense<0.000000e+00> : vector<8x128xf32>
    %9 = tpu.matmul %6, %7, %cst_9 {dimension_numbers = #tpu.dot_dimension_numbers<[1], [0], [0], [1], [0, 0, 1, 1], [], []>} : vector<8x128xf32>, vector<128x128xf32>, vector<8x128xf32> -> vector<8x128xf32>
    %10 = vector.broadcast %8 : vector<1x128xf32> to vector<8x128xf32>
    %11 = arith.addf %9, %10 : vector<8x128xf32>
    %12 = math.tanh %11 : vector<8x128xf32>
    %c0_10 = arith.constant 0 : index
    %c0_11 = arith.constant 0 : index
    %13 = vector.load %arg6[%c0_10, %c0_11] : memref<128x128xf32, #tpu.memory_space<vmem>>, vector<128x128xf32>
    %c0_12 = arith.constant 0 : index
    %c0_13 = arith.constant 0 : index
    %14 = vector.load %arg7[%c0_12, %c0_13] : memref<1x128xf32, #tpu.memory_space<vmem>>, vector<1x128xf32>
    %cst_14 = arith.constant dense<0.000000e+00> : vector<8x128xf32>
    %15 = tpu.matmul %12, %13, %cst_14 {dimension_numbers = #tpu.dot_dimension_numbers<[1], [0], [0], [1], [0, 0, 1, 1], [], []>} : vector<8x128xf32>, vector<128x128xf32>, vector<8x128xf32> -> vector<8x128xf32>
    %16 = vector.broadcast %14 : vector<1x128xf32> to vector<8x128xf32>
    %17 = arith.addf %15, %16 : vector<8x128xf32>
    %18 = math.tanh %17 : vector<8x128xf32>
    %c0_15 = arith.constant 0 : index
    %c0_16 = arith.constant 0 : index
    %19 = vector.load %arg8[%c0_15, %c0_16] : memref<128x128xf32, #tpu.memory_space<vmem>>, vector<128x128xf32>
    %c0_17 = arith.constant 0 : index
    %c0_18 = arith.constant 0 : index
    %20 = vector.load %arg9[%c0_17, %c0_18] : memref<1x128xf32, #tpu.memory_space<vmem>>, vector<1x128xf32>
    %cst_19 = arith.constant dense<0.000000e+00> : vector<8x128xf32>
    %21 = tpu.matmul %18, %19, %cst_19 {dimension_numbers = #tpu.dot_dimension_numbers<[1], [0], [0], [1], [0, 0, 1, 1], [], []>} : vector<8x128xf32>, vector<128x128xf32>, vector<8x128xf32> -> vector<8x128xf32>
    %22 = vector.broadcast %20 : vector<1x128xf32> to vector<8x128xf32>
    %23 = arith.addf %21, %22 : vector<8x128xf32>
    %24 = math.tanh %23 : vector<8x128xf32>
    %c0_20 = arith.constant 0 : index
    %c0_21 = arith.constant 0 : index
    %25 = vector.load %arg10[%c0_20, %c0_21] : memref<8x128xf32, #tpu.memory_space<vmem>>, vector<8x128xf32>
    tpu.vector_store %arg10[%c0_20, %c0_21], %24 {strides = array<i32>} : memref<8x128xf32, #tpu.memory_space<vmem>>, vector<8x128xf32>,
    return
  }
  func.func @transform_0(%arg0: i32) -> (i32, i32) {
    %c0_i32 = arith.constant 0 : i32
    %c0_i32_0 = arith.constant 0 : i32
    return %arg0, %c0_i32 : i32, i32
  }
  func.func @transform_1(%arg0: i32) -> (i32, i32) {
    %c0_i32 = arith.constant 0 : i32
    %c0_i32_0 = arith.constant 0 : i32
    %c0_i32_1 = arith.constant 0 : i32
    return %c0_i32, %c0_i32_0 : i32, i32
  }
  func.func @transform_2(%arg0: i32) -> (i32, i32) {
    %c0_i32 = arith.constant 0 : i32
    %c0_i32_0 = arith.constant 0 : i32
    %c0_i32_1 = arith.constant 0 : i32
    return %c0_i32, %c0_i32_0 : i32, i32
  }
  func.func @transform_3(%arg0: i32) -> (i32, i32) {
    %c0_i32 = arith.constant 0 : i32
    %c0_i32_0 = arith.constant 0 : i32
    %c0_i32_1 = arith.constant 0 : i32
    return %c0_i32, %c0_i32_0 : i32, i32
  }
  func.func @transform_4(%arg0: i32) -> (i32, i32) {
    %c0_i32 = arith.constant 0 : i32
    %c0_i32_0 = arith.constant 0 : i32
    %c0_i32_1 = arith.constant 0 : i32
    return %c0_i32, %c0_i32_0 : i32, i32
  }
  func.func @transform_5(%arg0: i32) -> (i32, i32) {
    %c0_i32 = arith.constant 0 : i32
    %c0_i32_0 = arith.constant 0 : i32
    %c0_i32_1 = arith.constant 0 : i32
    return %c0_i32, %c0_i32_0 : i32, i32
  }
  func.func @transform_6(%arg0: i32) -> (i32, i32) {
    %c0_i32 = arith.constant 0 : i32
    %c0_i32_0 = arith.constant 0 : i32
    %c0_i32_1 = arith.constant 0 : i32
    return %c0_i32, %c0_i32_0 : i32, i32
  }
  func.func @transform_7(%arg0: i32) -> (i32, i32) {
    %c0_i32 = arith.constant 0 : i32
    %c0_i32_0 = arith.constant 0 : i32
    %c0_i32_1 = arith.constant 0 : i32
    return %c0_i32, %c0_i32_0 : i32, i32
  }
  func.func @transform_8(%arg0: i32) -> (i32, i32) {
    %c0_i32 = arith.constant 0 : i32
    %c0_i32_0 = arith.constant 0 : i32
    %c0_i32_1 = arith.constant 0 : i32
    return %c0_i32, %c0_i32_0 : i32, i32
  }
  func.func @transform_9(%arg0: i32) -> (i32, i32) {
    %c0_i32 = arith.constant 0 : i32
    %c0_i32_0 = arith.constant 0 : i32
    return %arg0, %c0_i32 : i32, i32
  }
}

</mosaic_0001>

<bundles_post_ra>
// kernel: tpu_custom_call.1
= control target key start
LH: loop header
LB: loop body
LE: loop exit
PB: predicated region body
PF: predicated region fallthrough
CT: control target
= control target key end

     0   :  { %14 = vsyncpa [#allocation3], 0  ;;  %s554_s0 = inlined_call_operand.hbm [shape: f32[8,128], index: 0, kind: input, shape index: {}]   ;;  %s555_s1 = inlined_call_operand.hbm [shape: f32[128,128], index: 1, kind: input, shape index: {}]   ;;  %s556_s2 = inlined_call_operand.vmem [shape: f32[1,128], index: 2, kind: input, shape index: {}]   ;;  %s557_s3 = inlined_call_operand.hbm [shape: f32[128,128], index: 3, kind: input, shape index: {}]   ;;  %s558_s4 = inlined_call_operand.vmem [shape: f32[1,128], index: 4, kind: input, shape index: {}]   ;;  %s559_s5 = inlined_call_operand.hbm [shape: f32[128,128], index: 5, kind: input, shape index: {}]   ;;  %s560_s6 = inlined_call_operand.vmem [shape: f32[1,128], index: 6, kind: input, shape index: {}]   ;;  %s561_s7 = inlined_call_operand.hbm [shape: f32[128,128], index: 7, kind: input, shape index: {}]   ;;  %s562_s8 = inlined_call_operand.vmem [shape: f32[1,128], index: 8, kind: input, shape index: {}]   ;;  %s563_s9 = inlined_call_operand.hbm [shape: f32[8,128], index: 9, kind: output, shape index: {}]  }
   0x1   :  { %15 = vsyncpa [#allocation6], 0 }
   0x2   :  { %16 = vsyncpa [#allocation9], 0  ;;  %s33_s11 = sshll.u32 %s555_s1, 4  ;;  %s34_s11 = int_to_ptr.hbm [resolvable:$true] %s33_s11 }
   0x3   :  { %17 = vsyncpa [#allocation4], 0  ;;  %s466_s12 = smov [#allocation5]   ;;  %s63_s16 = sshll.u32 %s559_s5, 4  ;;  %s64_s16 = int_to_ptr.hbm [resolvable:$true] %s63_s16 }
   0x4   :  { %s35_s13 = sshll.u32 %s466_s12, 4  ;;  %s467_s17 = smov 128   ;;  %s36_s13 = int_to_ptr.vmem [resolvable:$true] %s35_s13 }
   0x5   :  { %s468_s18 = smov 8   ;;  %s469_s19 = smov [#allocation8]  }
   0x6   :  { %41 = dma.hbm_to_vmem [thread:$0]  %s34_s11, 2048, %s36_s13, [#allocation6], %s467_s17, %s467_s17, %s468_s18  }
   0x7   :  { %s65_s20 = sshll.u32 %s469_s19, 4  ;;  %s23_s23 = sshll.u32 %s554_s0, 4  ;;  %s66_s20 = int_to_ptr.vmem [resolvable:$true] %s65_s20  ;;  %s24_s23 = int_to_ptr.hbm [resolvable:$true] %s23_s23 }
   0x8   :  { %71 = dma.hbm_to_vmem [thread:$0]  %s64_s16, 2048, %s66_s20, [#allocation9], %s467_s17, %s467_s17, %s468_s18  }
   0x9   :  { %s48_s25 = sshll.u32 %s557_s3, 4  ;;  %s470_s26 = smov [#allocation2]   ;;  %s49_s25 = int_to_ptr.hbm [resolvable:$true] %s48_s25 }
   0xa   :  { %s25_s27 = sshll.u32 %s470_s26, 4  ;;  %s471_s5 = smov [#allocation7]   ;;  %s26_s27 = int_to_ptr.vmem [resolvable:$true] %s25_s27 }
   0xb   :  { %28 = dma.hbm_to_vmem [thread:$0]  %s24_s23, 128, %s26_s27, [#allocation3]  }
   0xc   :  { %s50_s28 = sshll.u32 %s471_s5, 4  ;;  %s78_s10 = sshll.u32 %s561_s7, 4  ;;  %s51_s28 = int_to_ptr.vmem [resolvable:$true] %s50_s28  ;;  %s79_s10 = int_to_ptr.hbm [resolvable:$true] %s78_s10 }
   0xd   :  { %56 = dma.hbm_to_vmem [thread:$0]  %s49_s25, 2048, %s51_s28, [#allocation6], %s467_s17, %s467_s17, %s468_s18  }
   0xe   :  { %s472_s0 = smov [#allocation10]  }
   0xf   :  { %s80_s11 = sshll.u32 %s472_s0, 4  ;;  %s81_s11 = int_to_ptr.vmem [resolvable:$true] %s80_s11 }
  0x10   :  { %86 = dma.hbm_to_vmem [thread:$0]  %s79_s10, 2048, %s81_s11, [#allocation9], %s467_s17, %s467_s17, %s468_s18  }
  0x11   :  { %458 = dma.done.wait [#allocation3], 128  }
  0x12   :  { %459 = vsyncadd [#allocation3], 4294967168 }
  0x13   :  { %460 = dma.done.wait [#allocation6], 4096  }
  0x14   :  { %461 = vsyncadd [#allocation6], 4294963200 }
  0x15   :  { %462 = dma.done.wait [#allocation9], 4096  }
  0x16   :  { %463 = vsyncadd [#allocation9], 4294963200  ;;  %v125_v0 = vld [vmem:[#allocation5 + $0x78] sm:$0xff]  ;;  %v124_v1 = vld [vmem:[#allocation5 + $0x70] sm:$0xff]  ;;  %s473_s16 = smov [#allocation11]   ;;  %s282_s20 = sshll.u32 %s563_s9, 4  ;;  %s283_s20 = int_to_ptr.hbm [resolvable:$true] %s282_s20 }
  0x17   :  { %130 = vmatpush.msra.mxu0 %v125_v0  ;;  %v123_v2 = vld [vmem:[#allocation5 + $0x68] sm:$0xff]  ;;  %v122_v3 = vld [vmem:[#allocation5 + $0x60] sm:$0xff]  ;;  %v166_v4 = vld [vmem:[#allocation7 + $0x78] sm:$0xff]  ;;  %s280_s17 = sshll.u32 %s473_s16, 4  ;;  %s281_s17 = int_to_ptr.vmem [resolvable:$true] %s280_s17 }
  0x18   :  { %v121_v5 = vld [vmem:[#allocation5 + $0x58] sm:$0xff]  ;;  %171 = vmatpush.msra.mxu1 %v166_v4  ;;  %v165_v6 = vld [vmem:[#allocation7 + $0x70] sm:$0xff]  ;;  %v164_v7 = vld [vmem:[#allocation7 + $0x68] sm:$0xff] }
  0x19   :  { %131 = vmatpush.msra.mxu0 %v124_v1  ;;  %v120_v8 = vld [vmem:[#allocation5 + $0x50] sm:$0xff]  ;;  %v119_v9 = vld [vmem:[#allocation5 + $0x48] sm:$0xff]  ;;  %v163_v10 = vld [vmem:[#allocation7 + $0x60] sm:$0xff] }
  0x1a   :  { %172 = vmatpush.msra.mxu1 %v165_v6  ;;  %v162_v11 = vld [vmem:[#allocation7 + $0x58] sm:$0xff]  ;;  %v118_v12 = vld [vmem:[#allocation5 + $0x40] sm:$0xff]  ;;  %v161_v13 = vld [vmem:[#allocation7 + $0x50] sm:$0xff] }
  0x1b   :  { %132 = vmatpush.msra.mxu0 %v123_v2  ;;  %v117_v14 = vld [vmem:[#allocation5 + $0x38] sm:$0xff]  ;;  %v160_v15 = vld [vmem:[#allocation7 + $0x48] sm:$0xff]  ;;  %v116_v16 = vld [vmem:[#allocation5 + $0x30] sm:$0xff] }
  0x1c   :  { %173 = vmatpush.msra.mxu1 %v164_v7  ;;  %v159_v17 = vld [vmem:[#allocation7 + $0x40] sm:$0xff]  ;;  %v115_v18 = vld [vmem:[#allocation5 + $0x28] sm:$0xff]  ;;  %v158_v19 = vld [vmem:[#allocation7 + $0x38] sm:$0xff] }
  0x1d   :  { %133 = vmatpush.msra.mxu0 %v122_v3  ;;  %v114_v20 = vld [vmem:[#allocation5 + $0x20] sm:$0xff]  ;;  %v157_v21 = vld [vmem:[#allocation7 + $0x30] sm:$0xff]  ;;  %v113_v22 = vld [vmem:[#allocation5 + $0x18] sm:$0xff] }
  0x1e   :  { %174 = vmatpush.msra.mxu1 %v163_v10  ;;  %v156_v23 = vld [vmem:[#allocation7 + $0x28] sm:$0xff]  ;;  %v112_v24 = vld [vmem:[#allocation5 + $0x10] sm:$0xff]  ;;  %v110_v26 = vld [vmem:[#allocation5] sm:$0xff] }
  0x1f   :  { %134 = vmatpush.msra.mxu0 %v121_v5  ;;  %v111_v25 = vld [vmem:[#allocation5 + $0x8] sm:$0xff]  ;;  %v109_v27 = vld [vmem:[#allocation2] sm:$0xff]  ;;  %v155_v28 = vld [vmem:[#allocation7 + $0x20] sm:$0xff] }
  0x20   :  { %175 = vmatpush.msra.mxu1 %v162_v11  ;;  %v154_v29 = vld [vmem:[#allocation7 + $0x18] sm:$0xff]  ;;  %v153_v30 = vld [vmem:[#allocation7 + $0x10] sm:$0xff]  ;;  %v152_v31 = vld [vmem:[#allocation7 + $0x8] sm:$0xff] }
  0x21   :  { %135 = vmatpush.msra.mxu0 %v120_v8  ;;  %v151_v32 = vld [vmem:[#allocation7] sm:$0xff]  ;;  %v207_v33 = vld [vmem:[#allocation8 + $0x78] sm:$0xff]  ;;  %v206_v34 = vld [vmem:[#allocation8 + $0x70] sm:$0xff] }
  0x22   :  { %176 = vmatpush.msra.mxu1 %v161_v13  ;;  %212 = vmatpush.msra.mxu2 %v207_v33  ;;  %v205_v35 = vld [vmem:[#allocation8 + $0x68] sm:$0xff]  ;;  %v204_v36 = vld [vmem:[#allocation8 + $0x60] sm:$0xff]  ;;  %v203_v37 = vld [vmem:[#allocation8 + $0x58] sm:$0xff] }
  0x23   :  { %136 = vmatpush.msra.mxu0 %v119_v9  ;;  %v202_v38 = vld [vmem:[#allocation8 + $0x50] sm:$0xff]  ;;  %v201_v39 = vld [vmem:[#allocation8 + $0x48] sm:$0xff]  ;;  %v200_v40 = vld [vmem:[#allocation8 + $0x40] sm:$0xff] }
  0x24   :  { %177 = vmatpush.msra.mxu1 %v160_v15  ;;  %213 = vmatpush.msra.mxu2 %v206_v34  ;;  %v199_v41 = vld [vmem:[#allocation8 + $0x38] sm:$0xff]  ;;  %v198_v42 = vld [vmem:[#allocation8 + $0x30] sm:$0xff]  ;;  %v197_v43 = vld [vmem:[#allocation8 + $0x28] sm:$0xff] }
  0x25   :  { %137 = vmatpush.msra.mxu0 %v118_v12  ;;  %v302_v44 = vld [vmem:[%s556_s2] ss:$0 sm:$0xff]  ;;  %v196_v48 = vld [vmem:[#allocation8 + $0x20] sm:$0xff]  ;;  %v194_v50 = vld [vmem:[#allocation8 + $0x10] sm:$0xff] }
  0x26   :  { %178 = vmatpush.msra.mxu1 %v159_v17  ;;  %214 = vmatpush.msra.mxu2 %v205_v35  ;;  %v195_v49 = vld [vmem:[#allocation8 + $0x18] sm:$0xff]  ;;  %v193_v51 = vld [vmem:[#allocation8 + $0x8] sm:$0xff]  ;;  %v192_v52 = vld [vmem:[#allocation8] sm:$0xff] }
  0x27   :  { %138 = vmatpush.msra.mxu0 %v117_v14  ;;  %v248_v53 = vld [vmem:[#allocation10 + $0x78] sm:$0xff]  ;;  %v247_v54 = vld [vmem:[#allocation10 + $0x70] sm:$0xff]  ;;  %v246_v55 = vld [vmem:[#allocation10 + $0x68] sm:$0xff] }
  0x28   :  { %179 = vmatpush.msra.mxu1 %v158_v19  ;;  %215 = vmatpush.msra.mxu2 %v204_v36  ;;  %v245_v56 = vld [vmem:[#allocation10 + $0x60] sm:$0xff]  ;;  %v244_v57 = vld [vmem:[#allocation10 + $0x58] sm:$0xff]  ;;  %v243_v58 = vld [vmem:[#allocation10 + $0x50] sm:$0xff] }
  0x29   :  { %139 = vmatpush.msra.mxu0 %v116_v16  ;;  %253 = vmatpush.msra.mxu3 %v248_v53  ;;  %v242_v59 = vld [vmem:[#allocation10 + $0x48] sm:$0xff]  ;;  %v241_v60 = vld [vmem:[#allocation10 + $0x40] sm:$0xff]  ;;  %v240_v61 = vld [vmem:[#allocation10 + $0x38] sm:$0xff] }
  0x2a   :  { %180 = vmatpush.msra.mxu1 %v157_v21  ;;  %216 = vmatpush.msra.mxu2 %v203_v37  ;;  %v239_v62 = vld [vmem:[#allocation10 + $0x30] sm:$0xff]  ;;  %v238_v63 = vld [vmem:[#allocation10 + $0x28] sm:$0xff]  ;;  %v303_v0 = vld [vmem:[%s558_s4] ss:$0 sm:$0xff] }
  0x2b   :  { %140 = vmatpush.msra.mxu0 %v115_v18  ;;  %254 = vmatpush.msra.mxu3 %v247_v54  ;;  %v237_v4 = vld [vmem:[#allocation10 + $0x20] sm:$0xff]  ;;  %v236_v5 = vld [vmem:[#allocation10 + $0x18] sm:$0xff]  ;;  %v235_v6 = vld [vmem:[#allocation10 + $0x10] sm:$0xff] }
  0x2c   :  { %181 = vmatpush.msra.mxu1 %v156_v23  ;;  %217 = vmatpush.msra.mxu2 %v202_v38  ;;  %v234_v7 = vld [vmem:[#allocation10 + $0x8] sm:$0xff]  ;;  %v233_v8 = vld [vmem:[#allocation10] sm:$0xff]  ;;  %v304_v9 = vld [vmem:[%s560_s6] ss:$0 sm:$0xff] }
  0x2d   :  { %141 = vmatpush.msra.mxu0 %v114_v20  ;;  %255 = vmatpush.msra.mxu3 %v246_v55  ;;  %v305_v13 = vld [vmem:[%s562_s8] ss:$0 sm:$0xff] }
  0x2e   :  { %182 = vmatpush.msra.mxu1 %v155_v28  ;;  %218 = vmatpush.msra.mxu2 %v201_v39 }
  0x2f   :  { %142 = vmatpush.msra.mxu0 %v113_v22  ;;  %256 = vmatpush.msra.mxu3 %v245_v56 }
  0x30   :  { %183 = vmatpush.msra.mxu1 %v154_v29  ;;  %219 = vmatpush.msra.mxu2 %v200_v40 }
  0x31   :  { %143 = vmatpush.msra.mxu0 %v112_v24  ;;  %257 = vmatpush.msra.mxu3 %v244_v57 }
  0x32   :  { %184 = vmatpush.msra.mxu1 %v153_v30  ;;  %220 = vmatpush.msra.mxu2 %v199_v41 }
  0x33   :  { %144 = vmatpush.msra.mxu0 %v111_v25  ;;  %258 = vmatpush.msra.mxu3 %v243_v58 }
  0x34   :  { %185 = vmatpush.msra.mxu1 %v152_v31  ;;  %221 = vmatpush.msra.mxu2 %v198_v42 }
  0x35   :  { %145 = vmatpush.msra.mxu0 %v110_v26  ;;  %259 = vmatpush.msra.mxu3 %v242_v59 }
  0x36   :  { %146 = vmatmul.f32.vlgmr.msra.gmra.mxu0 %v109_v27  ;;  %186 = vmatpush.msra.mxu1 %v151_v32 }
  0x37   :  { %222 = vmatpush.msra.mxu2 %v197_v43  ;;  %260 = vmatpush.msra.mxu3 %v241_v60 }
  0x39   :  { %223 = vmatpush.msra.mxu2 %v196_v48  ;;  %261 = vmatpush.msra.mxu3 %v240_v61 }
  0x3b   :  { %224 = vmatpush.msra.mxu2 %v195_v49  ;;  %262 = vmatpush.msra.mxu3 %v239_v62 }
  0x3d   :  { %225 = vmatpush.msra.mxu2 %v194_v50  ;;  %263 = vmatpush.msra.mxu3 %v238_v63 }
  0x3f   :  { %226 = vmatpush.msra.mxu2 %v193_v51  ;;  %264 = vmatpush.msra.mxu3 %v237_v4 }
  0x41   :  { %227 = vmatpush.msra.mxu2 %v192_v52  ;;  %265 = vmatpush.msra.mxu3 %v236_v5 }
  0x43   :  { %266 = vmatpush.msra.mxu3 %v235_v6 }
  0x45   :  { %267 = vmatpush.msra.mxu3 %v234_v7 }
  0x47   :  { %268 = vmatpush.msra.mxu3 %v233_v8 }
  0xb3   :  { %v147_v45 = vpop.f32.mrf.mxu0 }
  0xb4   :  { %v148_v46 = vadd.f32 %v302_v44, %v147_v45 }
  0xb6   :  { %306 = vtanh.f32 %v148_v46 }
  0xbc   :  { %v307_v47 = vpop.eup %306 }
  0xbd   :  { %187 = vmatmul.f32.vlgmr.msra.gmra.mxu1 %v307_v47 }
 0x13a   :  { %v188_v1 = vpop.f32.mrf.mxu1 }
 0x13b   :  { %v189_v2 = vadd.f32 %v303_v0, %v188_v1 }
 0x13d   :  { %308 = vtanh.f32 %v189_v2 }
 0x143   :  { %v309_v3 = vpop.eup %308 }
 0x144   :  { %228 = vmatmul.f32.vlgmr.msra.gmra.mxu2 %v309_v3 }
 0x1c7   :  { %v229_v10 = vpop.f32.mrf.mxu2 }
 0x1c8   :  { %v230_v11 = vadd.f32 %v304_v9, %v229_v10 }
 0x1ca   :  { %310 = vtanh.f32 %v230_v11 }
 0x1d0   :  { %v311_v12 = vpop.eup %310 }
 0x1d1   :  { %269 = vmatmul.f32.vlgmr.msra.gmra.mxu3 %v311_v12 }
 0x254   :  { %v270_v14 = vpop.f32.mrf.mxu3 }
 0x255   :  { %v271_v15 = vadd.f32 %v305_v13, %v270_v14 }
 0x257   :  { %312 = vtanh.f32 %v271_v15 }
 0x25d   :  { %v313_v16 = vpop.eup %312 }
 0x25e   :  { %274 = vst [vmem:[#allocation11] sm:$0xff] %v313_v16 }
 0x25f   :  { %285 = dma.vmem_to_hbm [thread:$0]  %s281_s17, 128, %s283_s20, [#allocation4]  }
 0x260   :  { %464 = dma.done.wait [#allocation4], 128  }
 0x261   :  { %465 = vsyncadd [#allocation4], 4294967168 }
 0x262   :  { %290 = vsyncpa [#allocation3], 1 }
 0x263   :  { %291 = vsyncpa [#allocation6], 1 }
 0x264   :  { %292 = vsyncpa [#allocation9], 1 }
 0x265   :  { %293 = vsyncpa [#allocation4], 1 }

// kernel: tpu_custom_call.1
= control target key start
LH: loop header
LB: loop body
LE: loop exit
PB: predicated region body
PF: predicated region fallthrough
CT: control target
= control target key end

     0   :  { %14 = vsyncpa [#allocation3], 0  ;;  %s554_s0 = inlined_call_operand.hbm [shape: f32[8,128], index: 0, kind: input, shape index: {}]   ;;  %s555_s1 = inlined_call_operand.hbm [shape: f32[128,128], index: 1, kind: input, shape index: {}]   ;;  %s556_s2 = inlined_call_operand.vmem [shape: f32[1,128], index: 2, kind: input, shape index: {}]   ;;  %s557_s3 = inlined_call_operand.hbm [shape: f32[128,128], index: 3, kind: input, shape index: {}]   ;;  %s558_s4 = inlined_call_operand.vmem [shape: f32[1,128], index: 4, kind: input, shape index: {}]   ;;  %s559_s5 = inlined_call_operand.hbm [shape: f32[128,128], index: 5, kind: input, shape index: {}]   ;;  %s560_s6 = inlined_call_operand.vmem [shape: f32[1,128], index: 6, kind: input, shape index: {}]   ;;  %s561_s7 = inlined_call_operand.hbm [shape: f32[128,128], index: 7, kind: input, shape index: {}]   ;;  %s562_s8 = inlined_call_operand.vmem [shape: f32[1,128], index: 8, kind: input, shape index: {}]   ;;  %s563_s9 = inlined_call_operand.hbm [shape: f32[8,128], index: 9, kind: output, shape index: {}]  }
   0x1   :  { %15 = vsyncpa [#allocation6], 0 }
   0x2   :  { %16 = vsyncpa [#allocation9], 0  ;;  %s33_s11 = sshll.u32 %s555_s1, 4  ;;  %s34_s11 = int_to_ptr.hbm [resolvable:$true] %s33_s11 }
   0x3   :  { %17 = vsyncpa [#allocation4], 0  ;;  %s466_s12 = smov [#allocation5]   ;;  %s63_s16 = sshll.u32 %s559_s5, 4  ;;  %s64_s16 = int_to_ptr.hbm [resolvable:$true] %s63_s16 }
   0x4   :  { %s35_s13 = sshll.u32 %s466_s12, 4  ;;  %s467_s17 = smov 128   ;;  %s36_s13 = int_to_ptr.vmem [resolvable:$true] %s35_s13 }
   0x5   :  { %s468_s18 = smov 8   ;;  %s469_s19 = smov [#allocation8]  }
   0x6   :  { %41 = dma.hbm_to_vmem [thread:$0]  %s34_s11, 2048, %s36_s13, [#allocation6], %s467_s17, %s467_s17, %s468_s18  }
   0x7   :  { %s65_s20 = sshll.u32 %s469_s19, 4  ;;  %s23_s23 = sshll.u32 %s554_s0, 4  ;;  %s66_s20 = int_to_ptr.vmem [resolvable:$true] %s65_s20  ;;  %s24_s23 = int_to_ptr.hbm [resolvable:$true] %s23_s23 }
   0x8   :  { %71 = dma.hbm_to_vmem [thread:$0]  %s64_s16, 2048, %s66_s20, [#allocation9], %s467_s17, %s467_s17, %s468_s18  }
   0x9   :  { %s48_s25 = sshll.u32 %s557_s3, 4  ;;  %s470_s26 = smov [#allocation2]   ;;  %s49_s25 = int_to_ptr.hbm [resolvable:$true] %s48_s25 }
   0xa   :  { %s25_s27 = sshll.u32 %s470_s26, 4  ;;  %s471_s5 = smov [#allocation7]   ;;  %s26_s27 = int_to_ptr.vmem [resolvable:$true] %s25_s27 }
   0xb   :  { %28 = dma.hbm_to_vmem [thread:$0]  %s24_s23, 128, %s26_s27, [#allocation3]  }
   0xc   :  { %s50_s28 = sshll.u32 %s471_s5, 4  ;;  %s78_s10 = sshll.u32 %s561_s7, 4  ;;  %s51_s28 = int_to_ptr.vmem [resolvable:$true] %s50_s28  ;;  %s79_s10 = int_to_ptr.hbm [resolvable:$true] %s78_s10 }
   0xd   :  { %56 = dma.hbm_to_vmem [thread:$0]  %s49_s25, 2048, %s51_s28, [#allocation6], %s467_s17, %s467_s17, %s468_s18  }
   0xe   :  { %s472_s0 = smov [#allocation10]  }
   0xf   :  { %s80_s11 = sshll.u32 %s472_s0, 4  ;;  %s81_s11 = int_to_ptr.vmem [resolvable:$true] %s80_s11 }
  0x10   :  { %86 = dma.hbm_to_vmem [thread:$0]  %s79_s10, 2048, %s81_s11, [#allocation9], %s467_s17, %s467_s17, %s468_s18  }
  0x11   :  { %458 = dma.done.wait [#allocation3], 128  }
  0x12   :  { %459 = vsyncadd [#allocation3], 4294967168 }
  0x13   :  { %460 = dma.done.wait [#allocation6], 4096  }
  0x14   :  { %461 = vsyncadd [#allocation6], 4294963200 }
  0x15   :  { %462 = dma.done.wait [#allocation9], 4096  }
  0x16   :  { %463 = vsyncadd [#allocation9], 4294963200  ;;  %v125_v0 = vld [vmem:[#allocation5 + $0x78] sm:$0xff]  ;;  %v124_v1 = vld [vmem:[#allocation5 + $0x70] sm:$0xff]  ;;  %s473_s16 = smov [#allocation11]   ;;  %s282_s20 = sshll.u32 %s563_s9, 4  ;;  %s283_s20 = int_to_ptr.hbm [resolvable:$true] %s282_s20 }
  0x17   :  { %130 = vmatpush.msra.mxu0 %v125_v0  ;;  %v123_v2 = vld [vmem:[#allocation5 + $0x68] sm:$0xff]  ;;  %v122_v3 = vld [vmem:[#allocation5 + $0x60] sm:$0xff]  ;;  %v166_v4 = vld [vmem:[#allocation7 + $0x78] sm:$0xff]  ;;  %s280_s17 = sshll.u32 %s473_s16, 4  ;;  %s281_s17 = int_to_ptr.vmem [resolvable:$true] %s280_s17 }
  0x18   :  { %v121_v5 = vld [vmem:[#allocation5 + $0x58] sm:$0xff]  ;;  %171 = vmatpush.msra.mxu1 %v166_v4  ;;  %v165_v6 = vld [vmem:[#allocation7 + $0x70] sm:$0xff]  ;;  %v164_v7 = vld [vmem:[#allocation7 + $0x68] sm:$0xff] }
  0x19   :  { %131 = vmatpush.msra.mxu0 %v124_v1  ;;  %v120_v8 = vld [vmem:[#allocation5 + $0x50] sm:$0xff]  ;;  %v119_v9 = vld [vmem:[#allocation5 + $0x48] sm:$0xff]  ;;  %v163_v10 = vld [vmem:[#allocation7 + $0x60] sm:$0xff] }
  0x1a   :  { %172 = vmatpush.msra.mxu1 %v165_v6  ;;  %v162_v11 = vld [vmem:[#allocation7 + $0x58] sm:$0xff]  ;;  %v118_v12 = vld [vmem:[#allocation5 + $0x40] sm:$0xff]  ;;  %v161_v13 = vld [vmem:[#allocation7 + $0x50] sm:$0xff] }
  0x1b   :  { %132 = vmatpush.msra.mxu0 %v123_v2  ;;  %v117_v14 = vld [vmem:[#allocation5 + $0x38] sm:$0xff]  ;;  %v160_v15 = vld [vmem:[#allocation7 + $0x48] sm:$0xff]  ;;  %v116_v16 = vld [vmem:[#allocation5 + $0x30] sm:$0xff] }
  0x1c   :  { %173 = vmatpush.msra.mxu1 %v164_v7  ;;  %v159_v17 = vld [vmem:[#allocation7 + $0x40] sm:$0xff]  ;;  %v115_v18 = vld [vmem:[#allocation5 + $0x28] sm:$0xff]  ;;  %v158_v19 = vld [vmem:[#allocation7 + $0x38] sm:$0xff] }
  0x1d   :  { %133 = vmatpush.msra.mxu0 %v122_v3  ;;  %v114_v20 = vld [vmem:[#allocation5 + $0x20] sm:$0xff]  ;;  %v157_v21 = vld [vmem:[#allocation7 + $0x30] sm:$0xff]  ;;  %v113_v22 = vld [vmem:[#allocation5 + $0x18] sm:$0xff] }
  0x1e   :  { %174 = vmatpush.msra.mxu1 %v163_v10  ;;  %v156_v23 = vld [vmem:[#allocation7 + $0x28] sm:$0xff]  ;;  %v112_v24 = vld [vmem:[#allocation5 + $0x10] sm:$0xff]  ;;  %v110_v26 = vld [vmem:[#allocation5] sm:$0xff] }
  0x1f   :  { %134 = vmatpush.msra.mxu0 %v121_v5  ;;  %v111_v25 = vld [vmem:[#allocation5 + $0x8] sm:$0xff]  ;;  %v109_v27 = vld [vmem:[#allocation2] sm:$0xff]  ;;  %v155_v28 = vld [vmem:[#allocation7 + $0x20] sm:$0xff] }
  0x20   :  { %175 = vmatpush.msra.mxu1 %v162_v11  ;;  %v154_v29 = vld [vmem:[#allocation7 + $0x18] sm:$0xff]  ;;  %v153_v30 = vld [vmem:[#allocation7 + $0x10] sm:$0xff]  ;;  %v152_v31 = vld [vmem:[#allocation7 + $0x8] sm:$0xff] }
  0x21   :  { %135 = vmatpush.msra.mxu0 %v120_v8  ;;  %v151_v32 = vld [vmem:[#allocation7] sm:$0xff]  ;;  %v207_v33 = vld [vmem:[#allocation8 + $0x78] sm:$0xff]  ;;  %v206_v34 = vld [vmem:[#allocation8 + $0x70] sm:$0xff] }
  0x22   :  { %176 = vmatpush.msra.mxu1 %v161_v13  ;;  %212 = vmatpush.msra.mxu2 %v207_v33  ;;  %v205_v35 = vld [vmem:[#allocation8 + $0x68] sm:$0xff]  ;;  %v204_v36 = vld [vmem:[#allocation8 + $0x60] sm:$0xff]  ;;  %v203_v37 = vld [vmem:[#allocation8 + $0x58] sm:$0xff] }
  0x23   :  { %136 = vmatpush.msra.mxu0 %v119_v9  ;;  %v202_v38 = vld [vmem:[#allocation8 + $0x50] sm:$0xff]  ;;  %v201_v39 = vld [vmem:[#allocation8 + $0x48] sm:$0xff]  ;;  %v200_v40 = vld [vmem:[#allocation8 + $0x40] sm:$0xff] }
  0x24   :  { %177 = vmatpush.msra.mxu1 %v160_v15  ;;  %213 = vmatpush.msra.mxu2 %v206_v34  ;;  %v199_v41 = vld [vmem:[#allocation8 + $0x38] sm:$0xff]  ;;  %v198_v42 = vld [vmem:[#allocation8 + $0x30] sm:$0xff]  ;;  %v197_v43 = vld [vmem:[#allocation8 + $0x28] sm:$0xff] }
  0x25   :  { %137 = vmatpush.msra.mxu0 %v118_v12  ;;  %v302_v44 = vld [vmem:[%s556_s2] ss:$0 sm:$0xff]  ;;  %v196_v48 = vld [vmem:[#allocation8 + $0x20] sm:$0xff]  ;;  %v194_v50 = vld [vmem:[#allocation8 + $0x10] sm:$0xff] }
  0x26   :  { %178 = vmatpush.msra.mxu1 %v159_v17  ;;  %214 = vmatpush.msra.mxu2 %v205_v35  ;;  %v195_v49 = vld [vmem:[#allocation8 + $0x18] sm:$0xff]  ;;  %v193_v51 = vld [vmem:[#allocation8 + $0x8] sm:$0xff]  ;;  %v192_v52 = vld [vmem:[#allocation8] sm:$0xff] }
  0x27   :  { %138 = vmatpush.msra.mxu0 %v117_v14  ;;  %v248_v53 = vld [vmem:[#allocation10 + $0x78] sm:$0xff]  ;;  %v247_v54 = vld [vmem:[#allocation10 + $0x70] sm:$0xff]  ;;  %v246_v55 = vld [vmem:[#allocation10 + $0x68] sm:$0xff] }
  0x28   :  { %179 = vmatpush.msra.mxu1 %v158_v19  ;;  %215 = vmatpush.msra.mxu2 %v204_v36  ;;  %v245_v56 = vld [vmem:[#allocation10 + $0x60] sm:$0xff]  ;;  %v244_v57 = vld [vmem:[#allocation10 + $0x58] sm:$0xff]  ;;  %v243_v58 = vld [vmem:[#allocation10 + $0x50] sm:$0xff] }
  0x29   :  { %139 = vmatpush.msra.mxu0 %v116_v16  ;;  %253 = vmatpush.msra.mxu3 %v248_v53  ;;  %v242_v59 = vld [vmem:[#allocation10 + $0x48] sm:$0xff]  ;;  %v241_v60 = vld [vmem:[#allocation10 + $0x40] sm:$0xff]  ;;  %v240_v61 = vld [vmem:[#allocation10 + $0x38] sm:$0xff] }
  0x2a   :  { %180 = vmatpush.msra.mxu1 %v157_v21  ;;  %216 = vmatpush.msra.mxu2 %v203_v37  ;;  %v239_v62 = vld [vmem:[#allocation10 + $0x30] sm:$0xff]  ;;  %v238_v63 = vld [vmem:[#allocation10 + $0x28] sm:$0xff]  ;;  %v303_v0 = vld [vmem:[%s558_s4] ss:$0 sm:$0xff] }
  0x2b   :  { %140 = vmatpush.msra.mxu0 %v115_v18  ;;  %254 = vmatpush.msra.mxu3 %v247_v54  ;;  %v237_v4 = vld [vmem:[#allocation10 + $0x20] sm:$0xff]  ;;  %v236_v5 = vld [vmem:[#allocation10 + $0x18] sm:$0xff]  ;;  %v235_v6 = vld [vmem:[#allocation10 + $0x10] sm:$0xff] }
  0x2c   :  { %181 = vmatpush.msra.mxu1 %v156_v23  ;;  %217 = vmatpush.msra.mxu2 %v202_v38  ;;  %v234_v7 = vld [vmem:[#allocation10 + $0x8] sm:$0xff]  ;;  %v233_v8 = vld [vmem:[#allocation10] sm:$0xff]  ;;  %v304_v9 = vld [vmem:[%s560_s6] ss:$0 sm:$0xff] }
  0x2d   :  { %141 = vmatpush.msra.mxu0 %v114_v20  ;;  %255 = vmatpush.msra.mxu3 %v246_v55  ;;  %v305_v13 = vld [vmem:[%s562_s8] ss:$0 sm:$0xff] }
  0x2e   :  { %182 = vmatpush.msra.mxu1 %v155_v28  ;;  %218 = vmatpush.msra.mxu2 %v201_v39 }
  0x2f   :  { %142 = vmatpush.msra.mxu0 %v113_v22  ;;  %256 = vmatpush.msra.mxu3 %v245_v56 }
  0x30   :  { %183 = vmatpush.msra.mxu1 %v154_v29  ;;  %219 = vmatpush.msra.mxu2 %v200_v40 }
  0x31   :  { %143 = vmatpush.msra.mxu0 %v112_v24  ;;  %257 = vmatpush.msra.mxu3 %v244_v57 }
  0x32   :  { %184 = vmatpush.msra.mxu1 %v153_v30  ;;  %220 = vmatpush.msra.mxu2 %v199_v41 }
  0x33   :  { %144 = vmatpush.msra.mxu0 %v111_v25  ;;  %258 = vmatpush.msra.mxu3 %v243_v58 }
  0x34   :  { %185 = vmatpush.msra.mxu1 %v152_v31  ;;  %221 = vmatpush.msra.mxu2 %v198_v42 }
  0x35   :  { %145 = vmatpush.msra.mxu0 %v110_v26  ;;  %259 = vmatpush.msra.mxu3 %v242_v59 }
  0x36   :  { %146 = vmatmul.f32.vlgmr.msra.gmra.mxu0 %v109_v27  ;;  %186 = vmatpush.msra.mxu1 %v151_v32 }
  0x37   :  { %222 = vmatpush.msra.mxu2 %v197_v43  ;;  %260 = vmatpush.msra.mxu3 %v241_v60 }
  0x39   :  { %223 = vmatpush.msra.mxu2 %v196_v48  ;;  %261 = vmatpush.msra.mxu3 %v240_v61 }
  0x3b   :  { %224 = vmatpush.msra.mxu2 %v195_v49  ;;  %262 = vmatpush.msra.mxu3 %v239_v62 }
  0x3d   :  { %225 = vmatpush.msra.mxu2 %v194_v50  ;;  %263 = vmatpush.msra.mxu3 %v238_v63 }
  0x3f   :  { %226 = vmatpush.msra.mxu2 %v193_v51  ;;  %264 = vmatpush.msra.mxu3 %v237_v4 }
  0x41   :  { %227 = vmatpush.msra.mxu2 %v192_v52  ;;  %265 = vmatpush.msra.mxu3 %v236_v5 }
  0x43   :  { %266 = vmatpush.msra.mxu3 %v235_v6 }
  0x45   :  { %267 = vmatpush.msra.mxu3 %v234_v7 }
  0x47   :  { %268 = vmatpush.msra.mxu3 %v233_v8 }
  0xb3   :  { %v147_v45 = vpop.f32.mrf.mxu0 }
  0xb4   :  { %v148_v46 = vadd.f32 %v302_v44, %v147_v45 }
  0xb6   :  { %306 = vtanh.f32 %v148_v46 }
  0xbc   :  { %v307_v47 = vpop.eup %306 }
  0xbd   :  { %187 = vmatmul.f32.vlgmr.msra.gmra.mxu1 %v307_v47 }
 0x13a   :  { %v188_v1 = vpop.f32.mrf.mxu1 }
 0x13b   :  { %v189_v2 = vadd.f32 %v303_v0, %v188_v1 }
 0x13d   :  { %308 = vtanh.f32 %v189_v2 }
 0x143   :  { %v309_v3 = vpop.eup %308 }
 0x144   :  { %228 = vmatmul.f32.vlgmr.msra.gmra.mxu2 %v309_v3 }
 0x1c7   :  { %v229_v10 = vpop.f32.mrf.mxu2 }
 0x1c8   :  { %v230_v11 = vadd.f32 %v304_v9, %v229_v10 }
 0x1ca   :  { %310 = vtanh.f32 %v230_v11 }
 0x1d0   :  { %v311_v12 = vpop.eup %310 }
 0x1d1   :  { %269 = vmatmul.f32.vlgmr.msra.gmra.mxu3 %v311_v12 }
 0x254   :  { %v270_v14 = vpop.f32.mrf.mxu3 }
 0x255   :  { %v271_v15 = vadd.f32 %v305_v13, %v270_v14 }
 0x257   :  { %312 = vtanh.f32 %v271_v15 }
 0x25d   :  { %v313_v16 = vpop.eup %312 }
 0x25e   :  { %274 = vst [vmem:[#allocation11] sm:$0xff] %v313_v16 }
 0x25f   :  { %285 = dma.vmem_to_hbm [thread:$0]  %s281_s17, 128, %s283_s20, [#allocation4]  }
 0x260   :  { %464 = dma.done.wait [#allocation4], 128  }
 0x261   :  { %465 = vsyncadd [#allocation4], 4294967168 }
 0x262   :  { %290 = vsyncpa [#allocation3], 1 }
 0x263   :  { %291 = vsyncpa [#allocation6], 1 }
 0x264   :  { %292 = vsyncpa [#allocation9], 1 }
 0x265   :  { %293 = vsyncpa [#allocation4], 1 }

</bundles_post_ra>
